<compile_context>
chip_gen: v7x
topology: tpu7x:2x2x1
jax: 0.10.0
libtpu: 0.0.40
codegen_flags: <defaults>
</compile_context>

<pallas_src>
import functools
import math

import numpy as np
import jax
import jax.numpy as jnp
from jax.experimental import pallas as pl
from jax.experimental.pallas import tpu as pltpu


def _pad8(c):
    return max(8, ((c + 7) // 8) * 8)


def _vmem_limit_bytes():
    """Per-generation VMEM budget: ~3/4 of physical, capped at 100 MiB.
    v5e/v6e (128 MiB) -> 96 MiB; v7x (64 MiB) -> 48 MiB; fallback 48 MiB."""
    try:
        cap = pltpu.get_tpu_info().vmem_capacity_bytes
    except Exception:
        cap = 64 * 1024 * 1024
    return int(min(cap * 3 // 4, 100 * 1024 * 1024))


# ----------------------------------------------------------------------------
# Fused kernel: 1x1 conv -> 3x3 conv -> 3x3 conv -> channel concat
# ----------------------------------------------------------------------------
def _cat_bottleneck_kernel(x_ref, w1_ref, b1_ref, w2_ref, b2_ref,
                           w3_ref, b3_ref, col_ref, o_ref, *, H, W):
    # x_ref : (1, Cin_p, HW)       bf16, channels-first, pixels on lanes
    # w1_ref: (C1_p, Cin_p)        bf16, 1x1 conv weight with BN scale folded
    # w2_ref: (3, C2_p, 3*C1_p)    bf16, 3x3 weight grouped by kernel row (dh)
    # w3_ref: (3, C3_p, 3*C2_p)    bf16
    # b*_ref: (C*_p, 1)            f32 folded BN bias
    # col_ref: (1, HW)             int32 column index of every pixel
    # o_ref : (1, C1_p+C2_p+C3_p, HW) f32, concatenated (channel-padded) output
    HW = H * W
    f32 = jnp.float32
    bf16 = jnp.bfloat16

    # ---- border-validity masks, built in-kernel ------------------------------
    pix = jax.lax.broadcasted_iota(jnp.int32, (1, HW), 1)
    col = col_ref[...]
    not_top = (pix >= W).astype(f32)              # h - 1 >= 0
    not_bot = (pix < (H - 1) * W).astype(f32)     # h + 1 <  H
    not_lft = (col >= 1).astype(f32)              # w - 1 >= 0
    not_rgt = (col < (W - 1)).astype(f32)         # w + 1 <  W
    rmask = (not_top, None, not_bot)              # index with dh + 1
    cmask = (not_lft, None, not_rgt)              # index with dw + 1

    def tap(act, dh, dw):
        # act: (C, HW) f32.  Returns act shifted by (dh, dw), zero outside the
        # image (matches Conv2d padding=1):  out[h*W+w] = act[(h+dh)*W+(w+dw)]
        d = dh * W + dw
        y = act if d == 0 else pltpu.roll(act, shift=(-d) % HW, axis=1)
        m = rmask[dh + 1]
        c = cmask[dw + 1]
        if m is None:
            m = c
        elif c is not None:
            m = m * c
        return y if m is None else y * m

    def conv3x3(act, w_ref_, b_ref_):
        # Tap-row grouped accumulation: 3 MXU dots with K = 3*C_in_p each,
        # accumulated in one f32 buffer (no (9*C, HW) im2col tensor).
        acc = None
        for g in range(3):                                   # dh = g - 1
            grp = jnp.concatenate([tap(act, g - 1, j - 1) for j in range(3)],
                                  axis=0)                    # (3*C_in_p, HW) f32
            part = jnp.dot(w_ref_[g], grp.astype(bf16),
                           preferred_element_type=f32)
            acc = part if acc is None else acc + part
        return jnp.maximum(acc + b_ref_[...], 0.0)           # f32 epilogue

    c1p = w1_ref.shape[0]
    c2p = w2_ref.shape[1]
    c3p = w3_ref.shape[1]

    # --- ConvX #1: 1x1 conv (+ folded BN) + ReLU ------------------------------
    x = x_ref[0]                                             # (Cin_p, HW) bf16
    out1 = jnp.maximum(
        jnp.dot(w1_ref[...], x, preferred_element_type=f32) + b1_ref[...], 0.0)
    o_ref[0, 0:c1p, :] = out1.astype(o_ref.dtype)

    # --- ConvX #2: 3x3 conv + BN + ReLU (out1 never leaves VMEM) --------------
    out2 = conv3x3(out1, w2_ref, b2_ref)
    o_ref[0, c1p:c1p + c2p, :] = out2.astype(o_ref.dtype)

    # --- ConvX #3: 3x3 conv + BN + ReLU ----------------------------------------
    out3 = conv3x3(out2, w3_ref, b3_ref)
    o_ref[0, c1p + c2p:c1p + c2p + c3p, :] = out3.astype(o_ref.dtype)


# ----------------------------------------------------------------------------
# Host-side parameter preparation (trace-time, free)
# ----------------------------------------------------------------------------
def _fold_bn(w, gamma, beta, mean, var, eps=1e-5):
    """w: (Cout, Cin, KH, KW) torch layout. Folds BN scale into w; returns bias."""
    scale = gamma / jnp.sqrt(var + eps)                  # (Cout,)
    bias = beta - mean * scale                           # (Cout,)
    return w * scale[:, None, None, None], bias


def _to_mat_1x1(w_f, cin_p, cout_p):
    cout, cin = w_f.shape[0], w_f.shape[1]
    m = jnp.zeros((cout_p, cin_p), jnp.float32)
    m = m.at[:cout, :cin].set(w_f[:, :, 0, 0])
    return m.astype(jnp.bfloat16)


def _to_mat_3x3_grouped(w_f, cin_p, cout_p):
    # Kernel-row (dh) grouped layout: m[g, co, j*cin_p + ci] = w_f[co, ci, g, j]
    cout, cin = w_f.shape[0], w_f.shape[1]
    m = jnp.zeros((3, cout_p, 3, cin_p), jnp.float32)
    m = m.at[:, :cout, :, :cin].set(jnp.transpose(w_f, (2, 0, 3, 1)))
    return m.reshape(3, cout_p, 3 * cin_p).astype(jnp.bfloat16)


def _pad_bias(b, cout_p):
    v = jnp.zeros((cout_p, 1), jnp.float32)
    return v.at[:b.shape[0], 0].set(b)


def _make_col_ids(H, W):
    return jnp.asarray(np.tile(np.arange(W, dtype=np.int32), H)[None, :])


# ----------------------------------------------------------------------------
# CatBottleneck forward (block_num=3, stride=1)
# ----------------------------------------------------------------------------
def cat_bottleneck_forward(x_nchw, params):
    (w1, g1, be1, m1, v1), (w2, g2, be2, m2, v2), (w3, g3, be3, m3, v3) = params
    B, cin, H, W = x_nchw.shape
    c1, c2, c3 = w1.shape[0], w2.shape[0], w3.shape[0]
    HW = H * W

    cin_p, c1_p, c2_p, c3_p = _pad8(cin), _pad8(c1), _pad8(c2), _pad8(c3)
    outp_p = c1_p + c2_p + c3_p

    w1f, b1 = _fold_bn(w1, g1, be1, m1, v1)
    w2f, b2 = _fold_bn(w2, g2, be2, m2, v2)
    w3f, b3 = _fold_bn(w3, g3, be3, m3, v3)

    w1m = _to_mat_1x1(w1f, cin_p, c1_p)               # (c1_p, cin_p)       bf16
    w2m = _to_mat_3x3_grouped(w2f, c1_p, c2_p)        # (3, c2_p, 3*c1_p)   bf16
    w3m = _to_mat_3x3_grouped(w3f, c2_p, c3_p)        # (3, c3_p, 3*c2_p)   bf16
    b1p, b2p, b3p = _pad_bias(b1, c1_p), _pad_bias(b2, c2_p), _pad_bias(b3, c3_p)
    col_ids = _make_col_ids(H, W)

    # channels-first, pixel-flattened, bf16 input; zero channel padding is a
    # no-op because the matching weight columns are zero.
    x2 = jnp.pad(x_nchw.reshape(B, cin, HW),
                 ((0, 0), (0, cin_p - cin), (0, 0))).astype(jnp.bfloat16)

    kernel = functools.partial(_cat_bottleneck_kernel, H=H, W=W)
    inv2 = lambda b: (0, 0)
    inv3 = lambda b: (0, 0, 0)

    out = pl.pallas_call(
        kernel,
        out_shape=jax.ShapeDtypeStruct((B, outp_p, HW), jnp.float32),
        grid_spec=pl.GridSpec(
            grid=(B,),
            in_specs=[
                pl.BlockSpec((1, cin_p, HW), lambda b: (b, 0, 0)),    # x
                # TODO(synk): these grid-invariant operands could be single-
                # buffered (pipeline_mode=pl.Buffered(1)) to trim duplicate
                # VMEM; left default for maximum compatibility (Pallas already
                # skips re-fetching blocks whose index does not change).
                pl.BlockSpec((c1_p, cin_p), inv2),                    # w1
                pl.BlockSpec((c1_p, 1), inv2),                        # b1
                pl.BlockSpec((3, c2_p, 3 * c1_p), inv3),              # w2
                pl.BlockSpec((c2_p, 1), inv2),                        # b2
                pl.BlockSpec((3, c3_p, 3 * c2_p), inv3),              # w3
                pl.BlockSpec((c3_p, 1), inv2),                        # b3
                pl.BlockSpec((1, HW), inv2),                          # col ids
            ],
            out_specs=pl.BlockSpec((1, outp_p, HW), lambda b: (b, 0, 0)),
        ),
        compiler_params=pltpu.CompilerParams(
            dimension_semantics=("parallel",),
            vmem_limit_bytes=_vmem_limit_bytes(),
        ),
    )(x2, w1m, b1p, w2m, b2p, w3m, b3p, col_ids)

    out = out.reshape(B, outp_p, H, W)
    if (c1_p, c2_p, c3_p) == (c1, c2, c3):
        return out                         # segments already tightly packed
    # strip per-segment channel padding (only needed for tiny demo channel counts)
    return jnp.concatenate(
        [out[:, 0:c1],
         out[:, c1_p:c1_p + c2],
         out[:, c1_p + c2_p:c1_p + c2_p + c3]], axis=1)


# ----------------------------------------------------------------------------
# Parameter init (mirrors a freshly-constructed PyTorch CatBottleneck)
# ----------------------------------------------------------------------------
def init_convx_params(key, cin, cout, kernel):
    fan_in = cin * kernel * kernel
    w = jax.random.normal(key, (cout, cin, kernel, kernel), jnp.float32)
    w = w * (1.0 / math.sqrt(fan_in))
    gamma = jnp.ones((cout,), jnp.float32)
    beta = jnp.zeros((cout,), jnp.float32)
    mean = jnp.zeros((cout,), jnp.float32)
    var = jnp.ones((cout,), jnp.float32)
    return (w, gamma, beta, mean, var)


def init_cat_bottleneck_params(key, in_planes, out_planes, block_num=3):
    assert block_num == 3, "script implements the default block_num=3 config"
    k0, k1, k2 = jax.random.split(key, 3)
    return [
        init_convx_params(k0, in_planes, out_planes // 2, 1),
        init_convx_params(k1, out_planes // 2, out_planes // 4, 3),
        init_convx_params(k2, out_planes // 4, out_planes // 4, 3),
    ]


# ----------------------------------------------------------------------------
# Pure-JAX references (lax.conv) for the correctness checks
# ----------------------------------------------------------------------------
def _convx_ref(x_nchw, w, gamma, beta, mean, var, eps=1e-5):
    y = jax.lax.conv_general_dilated(
        x_nchw, w, window_strides=(1, 1), padding="SAME",
        dimension_numbers=("NCHW", "OIHW", "NCHW"),
        precision=jax.lax.Precision.HIGHEST)
    scale = gamma / jnp.sqrt(var + eps)
    y = y * scale[None, :, None, None] + (beta - mean * scale)[None, :, None, None]
    return jnp.maximum(y, 0.0)


def _cat_bottleneck_ref(x_nchw, params, quantize_bf16=False):
    (w1, g1, be1, m1, v1), (w2, g2, be2, m2, v2), (w3, g3, be3, m3, v3) = params
    if not quantize_bf16:
        o1 = _convx_ref(x_nchw, w1, g1, be1, m1, v1)
        o2 = _convx_ref(o1, w2, g2, be2, m2, v2)
        o3 = _convx_ref(o2, w3, g3, be3, m3, v3)
        return jnp.concatenate([o1, o2, o3], axis=1)

    # Mirror the kernel's quantization points: BN folded into weights, bf16
    # activations/weights at each conv input, f32 accumulate + f32 bias/ReLU.
    def conv_q(xq, w_f, bias):
        xb = xq.astype(jnp.bfloat16).astype(jnp.float32)
        wb = w_f.astype(jnp.bfloat16).astype(jnp.float32)
        y = jax.lax.conv_general_dilated(
            xb, wb, window_strides=(1, 1), padding="SAME",
            dimension_numbers=("NCHW", "OIHW", "NCHW"),
            precision=jax.lax.Precision.HIGHEST)
        return jnp.maximum(y + bias[None, :, None, None], 0.0)

    w1f, b1 = _fold_bn(w1, g1, be1, m1, v1)
    w2f, b2 = _fold_bn(w2, g2, be2, m2, v2)
    w3f, b3 = _fold_bn(w3, g3, be3, m3, v3)
    o1 = conv_q(x_nchw, w1f, b1)
    o2 = conv_q(o1, w2f, b2)
    o3 = conv_q(o2, w3f, b3)
    return jnp.concatenate([o1, o2, o3], axis=1)


if __name__ == "__main__":
    B, in_planes, H, W = 2, 4, 16, 16
    out_planes = 8

    key = jax.random.PRNGKey(0)
    kx, kp = jax.random.split(key)
    x = jax.random.normal(kx, (B, in_planes, H, W), jnp.float32)   # NCHW input
    params = init_cat_bottleneck_params(kp, in_planes, out_planes)

    out = jax.block_until_ready(cat_bottleneck_forward(x, params))
    assert out.shape == (B, out_planes, H, W), out.shape

    # Structural check: reference with the same bf16 quantization points.
    ref_q = jax.block_until_ready(_cat_bottleneck_ref(x, params, quantize_bf16=True))
    err_q = float(jnp.max(jnp.abs(out - ref_q)))
    assert err_q < 2e-2, f"mismatch vs bf16-mirrored reference: {err_q}"

    # Sanity check against the full-f32 module semantics (BN applied unfolded);
    # looser tolerance accounts for the intentional bf16 matmul inputs.
    ref_f = jax.block_until_ready(_cat_bottleneck_ref(x, params, quantize_bf16=False))
    err_f = float(jnp.max(jnp.abs(out - ref_f)))
    assert err_f < 0.3, f"mismatch vs f32 reference: {err_f}"

    print("KERNEL_OK")
</pallas_src>

<mosaic_0001>
module attributes {stable_mosaic.version = 11 : i64} {
  func.func @_cat_bottleneck_kernel(%arg0: i32, %arg1: memref<1x8x256xbf16, #tpu.memory_space<vmem>>, %arg2: memref<8x8xbf16, #tpu.memory_space<vmem>>, %arg3: memref<8x1xf32, #tpu.memory_space<vmem>>, %arg4: memref<3x8x24xbf16, #tpu.memory_space<vmem>>, %arg5: memref<8x1xf32, #tpu.memory_space<vmem>>, %arg6: memref<3x8x24xbf16, #tpu.memory_space<vmem>>, %arg7: memref<8x1xf32, #tpu.memory_space<vmem>>, %arg8: memref<1x256xi32, #tpu.memory_space<vmem>>, %arg9: memref<1x24x256xf32, #tpu.memory_space<vmem>>) attributes {dimension_semantics = [#tpu.dimension_semantics<parallel>], iteration_bounds = array<i64: 2>, scalar_prefetch = 0 : i64, scratch_operands = 0 : i64, tpu.core_type = #tpu.core_type<tc>, window_params = [{transform_indices = @transform_0, window_bounds = array<i64: 1, 8, 256>}, {pipeline_mode = #tpu.pipeline_mode<synchronous>, transform_indices = @transform_1, window_bounds = array<i64: 8, 8>}, {pipeline_mode = #tpu.pipeline_mode<synchronous>, transform_indices = @transform_2, window_bounds = array<i64: 8, 1>}, {pipeline_mode = #tpu.pipeline_mode<synchronous>, transform_indices = @transform_3, window_bounds = array<i64: 3, 8, 24>}, {pipeline_mode = #tpu.pipeline_mode<synchronous>, transform_indices = @transform_4, window_bounds = array<i64: 8, 1>}, {pipeline_mode = #tpu.pipeline_mode<synchronous>, transform_indices = @transform_5, window_bounds = array<i64: 3, 8, 24>}, {pipeline_mode = #tpu.pipeline_mode<synchronous>, transform_indices = @transform_6, window_bounds = array<i64: 8, 1>}, {pipeline_mode = #tpu.pipeline_mode<synchronous>, transform_indices = @transform_7, window_bounds = array<i64: 1, 256>}, {transform_indices = @transform_8, window_bounds = array<i64: 1, 24, 256>}]} {
    %0 = tpu.iota {dimensions = array<i32: 1>} : vector<1x256xi32>
    %c0 = arith.constant 0 : index
    %c0_0 = arith.constant 0 : index
    %1 = vector.load %arg8[%c0, %c0_0] : memref<1x256xi32, #tpu.memory_space<vmem>>, vector<1x256xi32>
    %c16_i32 = arith.constant 16 : i32
    %2 = vector.broadcast %c16_i32 : i32 to vector<1x256xi32>
    %3 = arith.cmpi sge, %0, %2 : vector<1x256xi32>
    %4 = arith.extui %3 : vector<1x256xi1> to vector<1x256xi32>
    %5 = arith.sitofp %4 : vector<1x256xi32> to vector<1x256xf32>
    %c240_i32 = arith.constant 240 : i32
    %6 = vector.broadcast %c240_i32 : i32 to vector<1x256xi32>
    %7 = arith.cmpi slt, %0, %6 : vector<1x256xi32>
    %8 = arith.extui %7 : vector<1x256xi1> to vector<1x256xi32>
    %9 = arith.sitofp %8 : vector<1x256xi32> to vector<1x256xf32>
    %c1_i32 = arith.constant 1 : i32
    %10 = vector.broadcast %c1_i32 : i32 to vector<1x256xi32>
    %11 = arith.cmpi sge, %1, %10 : vector<1x256xi32>
    %12 = arith.extui %11 : vector<1x256xi1> to vector<1x256xi32>
    %13 = arith.sitofp %12 : vector<1x256xi32> to vector<1x256xf32>
    %c15_i32 = arith.constant 15 : i32
    %14 = vector.broadcast %c15_i32 : i32 to vector<1x256xi32>
    %15 = arith.cmpi slt, %1, %14 : vector<1x256xi32>
    %16 = arith.extui %15 : vector<1x256xi1> to vector<1x256xi32>
    %17 = arith.sitofp %16 : vector<1x256xi32> to vector<1x256xf32>
    %c0_1 = arith.constant 0 : index
    %c0_2 = arith.constant 0 : index
    %c0_3 = arith.constant 0 : index
    %18 = vector.load %arg1[%c0_1, %c0_2, %c0_3] : memref<1x8x256xbf16, #tpu.memory_space<vmem>>, vector<1x8x256xbf16>
    %19 = vector.shape_cast %18 : vector<1x8x256xbf16> to vector<8x256xbf16>
    %c0_4 = arith.constant 0 : index
    %c0_5 = arith.constant 0 : index
    %20 = vector.load %arg2[%c0_4, %c0_5] : memref<8x8xbf16, #tpu.memory_space<vmem>>, vector<8x8xbf16>
    %cst = arith.constant dense<0.000000e+00> : vector<8x256xf32>
    %21 = tpu.matmul %20, %19, %cst {dimension_numbers = #tpu.dot_dimension_numbers<[1], [0], [0], [1], [0, 0, 1, 1], [], []>} : vector<8x8xbf16>, vector<8x256xbf16>, vector<8x256xf32> -> vector<8x256xf32>
    %c0_6 = arith.constant 0 : index
    %c0_7 = arith.constant 0 : index
    %22 = vector.load %arg3[%c0_6, %c0_7] : memref<8x1xf32, #tpu.memory_space<vmem>>, vector<8x1xf32>
    %23 = vector.broadcast %22 : vector<8x1xf32> to vector<8x256xf32>
    %24 = arith.addf %21, %23 : vector<8x256xf32>
    %cst_8 = arith.constant 0.000000e+00 : f32
    %25 = vector.broadcast %cst_8 : f32 to vector<8x256xf32>
    %26 = arith.maximumf %24, %25 : vector<8x256xf32>
    %c0_9 = arith.constant 0 : index
    %c0_10 = arith.constant 0 : index
    %c0_11 = arith.constant 0 : index
    %27 = vector.load %arg9[%c0_9, %c0_10, %c0_11] : memref<1x24x256xf32, #tpu.memory_space<vmem>>, vector<1x8x256xf32>
    %28 = vector.shape_cast %27 : vector<1x8x256xf32> to vector<8x256xf32>
    %29 = vector.shape_cast %26 : vector<8x256xf32> to vector<1x8x256xf32>
    tpu.vector_store %arg9[%c0_9, %c0_10, %c0_11], %29 {strides = array<i32>} : memref<1x24x256xf32, #tpu.memory_space<vmem>>, vector<1x8x256xf32>,
    %c17_i32 = arith.constant 17 : i32
    %30 = tpu.dynamic_rotate %26 by %c17_i32 dim 1 : vector<8x256xf32>, i32 -> vector<8x256xf32>
    %31 = arith.mulf %5, %13 : vector<1x256xf32>
    %32 = vector.broadcast %31 : vector<1x256xf32> to vector<8x256xf32>
    %33 = arith.mulf %30, %32 : vector<8x256xf32>
    %c16_i32_12 = arith.constant 16 : i32
    %34 = tpu.dynamic_rotate %26 by %c16_i32_12 dim 1 : vector<8x256xf32>, i32 -> vector<8x256xf32>
    %35 = vector.broadcast %5 : vector<1x256xf32> to vector<8x256xf32>
    %36 = arith.mulf %34, %35 : vector<8x256xf32>
    %c15_i32_13 = arith.constant 15 : i32
    %37 = tpu.dynamic_rotate %26 by %c15_i32_13 dim 1 : vector<8x256xf32>, i32 -> vector<8x256xf32>
    %38 = arith.mulf %5, %17 : vector<1x256xf32>
    %39 = vector.broadcast %38 : vector<1x256xf32> to vector<8x256xf32>
    %40 = arith.mulf %37, %39 : vector<8x256xf32>
    %41 = tpu.concatenate %33, %36, %40 in 0 : vector<8x256xf32>, vector<8x256xf32>, vector<8x256xf32> -> vector<24x256xf32>
    %c0_14 = arith.constant 0 : index
    %c0_15 = arith.constant 0 : index
    %c0_16 = arith.constant 0 : index
    %42 = vector.load %arg4[%c0_14, %c0_15, %c0_16] : memref<3x8x24xbf16, #tpu.memory_space<vmem>>, vector<1x8x24xbf16>
    %43 = vector.shape_cast %42 : vector<1x8x24xbf16> to vector<8x24xbf16>
    %44 = arith.truncf %41 : vector<24x256xf32> to vector<24x256xbf16>
    %cst_17 = arith.constant dense<0.000000e+00> : vector<8x256xf32>
    %45 = tpu.matmul %43, %44, %cst_17 {dimension_numbers = #tpu.dot_dimension_numbers<[1], [0], [0], [1], [0, 0, 1, 1], [], []>} : vector<8x24xbf16>, vector<24x256xbf16>, vector<8x256xf32> -> vector<8x256xf32>
    %c1_i32_18 = arith.constant 1 : i32
    %46 = tpu.dynamic_rotate %26 by %c1_i32_18 dim 1 : vector<8x256xf32>, i32 -> vector<8x256xf32>
    %47 = vector.broadcast %13 : vector<1x256xf32> to vector<8x256xf32>
    %48 = arith.mulf %46, %47 : vector<8x256xf32>
    %c255_i32 = arith.constant 255 : i32
    %49 = tpu.dynamic_rotate %26 by %c255_i32 dim 1 : vector<8x256xf32>, i32 -> vector<8x256xf32>
    %50 = vector.broadcast %17 : vector<1x256xf32> to vector<8x256xf32>
    %51 = arith.mulf %49, %50 : vector<8x256xf32>
    %52 = tpu.concatenate %48, %26, %51 in 0 : vector<8x256xf32>, vector<8x256xf32>, vector<8x256xf32> -> vector<24x256xf32>
    %c1 = arith.constant 1 : index
    %c0_19 = arith.constant 0 : index
    %c0_20 = arith.constant 0 : index
    %53 = vector.load %arg4[%c1, %c0_19, %c0_20] : memref<3x8x24xbf16, #tpu.memory_space<vmem>>, vector<1x8x24xbf16>
    %54 = vector.shape_cast %53 : vector<1x8x24xbf16> to vector<8x24xbf16>
    %55 = arith.truncf %52 : vector<24x256xf32> to vector<24x256xbf16>
    %cst_21 = arith.constant dense<0.000000e+00> : vector<8x256xf32>
    %56 = tpu.matmul %54, %55, %cst_21 {dimension_numbers = #tpu.dot_dimension_numbers<[1], [0], [0], [1], [0, 0, 1, 1], [], []>} : vector<8x24xbf16>, vector<24x256xbf16>, vector<8x256xf32> -> vector<8x256xf32>
    %57 = arith.addf %45, %56 : vector<8x256xf32>
    %c241_i32 = arith.constant 241 : i32
    %58 = tpu.dynamic_rotate %26 by %c241_i32 dim 1 : vector<8x256xf32>, i32 -> vector<8x256xf32>
    %59 = arith.mulf %9, %13 : vector<1x256xf32>
    %60 = vector.broadcast %59 : vector<1x256xf32> to vector<8x256xf32>
    %61 = arith.mulf %58, %60 : vector<8x256xf32>
    %c240_i32_22 = arith.constant 240 : i32
    %62 = tpu.dynamic_rotate %26 by %c240_i32_22 dim 1 : vector<8x256xf32>, i32 -> vector<8x256xf32>
    %63 = vector.broadcast %9 : vector<1x256xf32> to vector<8x256xf32>
    %64 = arith.mulf %62, %63 : vector<8x256xf32>
    %c239_i32 = arith.constant 239 : i32
    %65 = tpu.dynamic_rotate %26 by %c239_i32 dim 1 : vector<8x256xf32>, i32 -> vector<8x256xf32>
    %66 = arith.mulf %9, %17 : vector<1x256xf32>
    %67 = vector.broadcast %66 : vector<1x256xf32> to vector<8x256xf32>
    %68 = arith.mulf %65, %67 : vector<8x256xf32>
    %69 = tpu.concatenate %61, %64, %68 in 0 : vector<8x256xf32>, vector<8x256xf32>, vector<8x256xf32> -> vector<24x256xf32>
    %c2 = arith.constant 2 : index
    %c0_23 = arith.constant 0 : index
    %c0_24 = arith.constant 0 : index
    %70 = vector.load %arg4[%c2, %c0_23, %c0_24] : memref<3x8x24xbf16, #tpu.memory_space<vmem>>, vector<1x8x24xbf16>
    %71 = vector.shape_cast %70 : vector<1x8x24xbf16> to vector<8x24xbf16>
    %72 = arith.truncf %69 : vector<24x256xf32> to vector<24x256xbf16>
    %cst_25 = arith.constant dense<0.000000e+00> : vector<8x256xf32>
    %73 = tpu.matmul %71, %72, %cst_25 {dimension_numbers = #tpu.dot_dimension_numbers<[1], [0], [0], [1], [0, 0, 1, 1], [], []>} : vector<8x24xbf16>, vector<24x256xbf16>, vector<8x256xf32> -> vector<8x256xf32>
    %74 = arith.addf %57, %73 : vector<8x256xf32>
    %c0_26 = arith.constant 0 : index
    %c0_27 = arith.constant 0 : index
    %75 = vector.load %arg5[%c0_26, %c0_27] : memref<8x1xf32, #tpu.memory_space<vmem>>, vector<8x1xf32>
    %76 = vector.broadcast %75 : vector<8x1xf32> to vector<8x256xf32>
    %77 = arith.addf %74, %76 : vector<8x256xf32>
    %cst_28 = arith.constant 0.000000e+00 : f32
    %78 = vector.broadcast %cst_28 : f32 to vector<8x256xf32>
    %79 = arith.maximumf %77, %78 : vector<8x256xf32>
    %c0_29 = arith.constant 0 : index
    %c8 = arith.constant 8 : index
    %c0_30 = arith.constant 0 : index
    %80 = vector.load %arg9[%c0_29, %c8, %c0_30] : memref<1x24x256xf32, #tpu.memory_space<vmem>>, vector<1x8x256xf32>
    %81 = vector.shape_cast %80 : vector<1x8x256xf32> to vector<8x256xf32>
    %82 = vector.shape_cast %79 : vector<8x256xf32> to vector<1x8x256xf32>
    tpu.vector_store %arg9[%c0_29, %c8, %c0_30], %82 {strides = array<i32>} : memref<1x24x256xf32, #tpu.memory_space<vmem>>, vector<1x8x256xf32>,
    %c17_i32_31 = arith.constant 17 : i32
    %83 = tpu.dynamic_rotate %79 by %c17_i32_31 dim 1 : vector<8x256xf32>, i32 -> vector<8x256xf32>
    %84 = arith.mulf %5, %13 : vector<1x256xf32>
    %85 = vector.broadcast %84 : vector<1x256xf32> to vector<8x256xf32>
    %86 = arith.mulf %83, %85 : vector<8x256xf32>
    %c16_i32_32 = arith.constant 16 : i32
    %87 = tpu.dynamic_rotate %79 by %c16_i32_32 dim 1 : vector<8x256xf32>, i32 -> vector<8x256xf32>
    %88 = vector.broadcast %5 : vector<1x256xf32> to vector<8x256xf32>
    %89 = arith.mulf %87, %88 : vector<8x256xf32>
    %c15_i32_33 = arith.constant 15 : i32
    %90 = tpu.dynamic_rotate %79 by %c15_i32_33 dim 1 : vector<8x256xf32>, i32 -> vector<8x256xf32>
    %91 = arith.mulf %5, %17 : vector<1x256xf32>
    %92 = vector.broadcast %91 : vector<1x256xf32> to vector<8x256xf32>
    %93 = arith.mulf %90, %92 : vector<8x256xf32>
    %94 = tpu.concatenate %86, %89, %93 in 0 : vector<8x256xf32>, vector<8x256xf32>, vector<8x256xf32> -> vector<24x256xf32>
    %c0_34 = arith.constant 0 : index
    %c0_35 = arith.constant 0 : index
    %c0_36 = arith.constant 0 : index
    %95 = vector.load %arg6[%c0_34, %c0_35, %c0_36] : memref<3x8x24xbf16, #tpu.memory_space<vmem>>, vector<1x8x24xbf16>
    %96 = vector.shape_cast %95 : vector<1x8x24xbf16> to vector<8x24xbf16>
    %97 = arith.truncf %94 : vector<24x256xf32> to vector<24x256xbf16>
    %cst_37 = arith.constant dense<0.000000e+00> : vector<8x256xf32>
    %98 = tpu.matmul %96, %97, %cst_37 {dimension_numbers = #tpu.dot_dimension_numbers<[1], [0], [0], [1], [0, 0, 1, 1], [], []>} : vector<8x24xbf16>, vector<24x256xbf16>, vector<8x256xf32> -> vector<8x256xf32>
    %c1_i32_38 = arith.constant 1 : i32
    %99 = tpu.dynamic_rotate %79 by %c1_i32_38 dim 1 : vector<8x256xf32>, i32 -> vector<8x256xf32>
    %100 = vector.broadcast %13 : vector<1x256xf32> to vector<8x256xf32>
    %101 = arith.mulf %99, %100 : vector<8x256xf32>
    %c255_i32_39 = arith.constant 255 : i32
    %102 = tpu.dynamic_rotate %79 by %c255_i32_39 dim 1 : vector<8x256xf32>, i32 -> vector<8x256xf32>
    %103 = vector.broadcast %17 : vector<1x256xf32> to vector<8x256xf32>
    %104 = arith.mulf %102, %103 : vector<8x256xf32>
    %105 = tpu.concatenate %101, %79, %104 in 0 : vector<8x256xf32>, vector<8x256xf32>, vector<8x256xf32> -> vector<24x256xf32>
    %c1_40 = arith.constant 1 : index
    %c0_41 = arith.constant 0 : index
    %c0_42 = arith.constant 0 : index
    %106 = vector.load %arg6[%c1_40, %c0_41, %c0_42] : memref<3x8x24xbf16, #tpu.memory_space<vmem>>, vector<1x8x24xbf16>
    %107 = vector.shape_cast %106 : vector<1x8x24xbf16> to vector<8x24xbf16>
    %108 = arith.truncf %105 : vector<24x256xf32> to vector<24x256xbf16>
    %cst_43 = arith.constant dense<0.000000e+00> : vector<8x256xf32>
    %109 = tpu.matmul %107, %108, %cst_43 {dimension_numbers = #tpu.dot_dimension_numbers<[1], [0], [0], [1], [0, 0, 1, 1], [], []>} : vector<8x24xbf16>, vector<24x256xbf16>, vector<8x256xf32> -> vector<8x256xf32>
    %110 = arith.addf %98, %109 : vector<8x256xf32>
    %c241_i32_44 = arith.constant 241 : i32
    %111 = tpu.dynamic_rotate %79 by %c241_i32_44 dim 1 : vector<8x256xf32>, i32 -> vector<8x256xf32>
    %112 = arith.mulf %9, %13 : vector<1x256xf32>
    %113 = vector.broadcast %112 : vector<1x256xf32> to vector<8x256xf32>
    %114 = arith.mulf %111, %113 : vector<8x256xf32>
    %c240_i32_45 = arith.constant 240 : i32
    %115 = tpu.dynamic_rotate %79 by %c240_i32_45 dim 1 : vector<8x256xf32>, i32 -> vector<8x256xf32>
    %116 = vector.broadcast %9 : vector<1x256xf32> to vector<8x256xf32>
    %117 = arith.mulf %115, %116 : vector<8x256xf32>
    %c239_i32_46 = arith.constant 239 : i32
    %118 = tpu.dynamic_rotate %79 by %c239_i32_46 dim 1 : vector<8x256xf32>, i32 -> vector<8x256xf32>
    %119 = arith.mulf %9, %17 : vector<1x256xf32>
    %120 = vector.broadcast %119 : vector<1x256xf32> to vector<8x256xf32>
    %121 = arith.mulf %118, %120 : vector<8x256xf32>
    %122 = tpu.concatenate %114, %117, %121 in 0 : vector<8x256xf32>, vector<8x256xf32>, vector<8x256xf32> -> vector<24x256xf32>
    %c2_47 = arith.constant 2 : index
    %c0_48 = arith.constant 0 : index
    %c0_49 = arith.constant 0 : index
    %123 = vector.load %arg6[%c2_47, %c0_48, %c0_49] : memref<3x8x24xbf16, #tpu.memory_space<vmem>>, vector<1x8x24xbf16>
    %124 = vector.shape_cast %123 : vector<1x8x24xbf16> to vector<8x24xbf16>
    %125 = arith.truncf %122 : vector<24x256xf32> to vector<24x256xbf16>
    %cst_50 = arith.constant dense<0.000000e+00> : vector<8x256xf32>
    %126 = tpu.matmul %124, %125, %cst_50 {dimension_numbers = #tpu.dot_dimension_numbers<[1], [0], [0], [1], [0, 0, 1, 1], [], []>} : vector<8x24xbf16>, vector<24x256xbf16>, vector<8x256xf32> -> vector<8x256xf32>
    %127 = arith.addf %110, %126 : vector<8x256xf32>
    %c0_51 = arith.constant 0 : index
    %c0_52 = arith.constant 0 : index
    %128 = vector.load %arg7[%c0_51, %c0_52] : memref<8x1xf32, #tpu.memory_space<vmem>>, vector<8x1xf32>
    %129 = vector.broadcast %128 : vector<8x1xf32> to vector<8x256xf32>
    %130 = arith.addf %127, %129 : vector<8x256xf32>
    %cst_53 = arith.constant 0.000000e+00 : f32
    %131 = vector.broadcast %cst_53 : f32 to vector<8x256xf32>
    %132 = arith.maximumf %130, %131 : vector<8x256xf32>
    %c0_54 = arith.constant 0 : index
    %c16 = arith.constant 16 : index
    %c0_55 = arith.constant 0 : index
    %133 = vector.load %arg9[%c0_54, %c16, %c0_55] : memref<1x24x256xf32, #tpu.memory_space<vmem>>, vector<1x8x256xf32>
    %134 = vector.shape_cast %133 : vector<1x8x256xf32> to vector<8x256xf32>
    %135 = vector.shape_cast %132 : vector<8x256xf32> to vector<1x8x256xf32>
    tpu.vector_store %arg9[%c0_54, %c16, %c0_55], %135 {strides = array<i32>} : memref<1x24x256xf32, #tpu.memory_space<vmem>>, vector<1x8x256xf32>,
    return
  }
  func.func @transform_0(%arg0: i32) -> (i32, i32, i32) {
    %c0_i32 = arith.constant 0 : i32
    %c0_i32_0 = arith.constant 0 : i32
    %c0_i32_1 = arith.constant 0 : i32
    return %arg0, %c0_i32, %c0_i32_0 : i32, i32, i32
  }
  func.func @transform_1(%arg0: i32) -> (i32, i32) {
    %c0_i32 = arith.constant 0 : i32
    %c0_i32_0 = arith.constant 0 : i32
    %c0_i32_1 = arith.constant 0 : i32
    return %c0_i32, %c0_i32_0 : i32, i32
  }
  func.func @transform_2(%arg0: i32) -> (i32, i32) {
    %c0_i32 = arith.constant 0 : i32
    %c0_i32_0 = arith.constant 0 : i32
    %c0_i32_1 = arith.constant 0 : i32
    return %c0_i32, %c0_i32_0 : i32, i32
  }
  func.func @transform_3(%arg0: i32) -> (i32, i32, i32) {
    %c0_i32 = arith.constant 0 : i32
    %c0_i32_0 = arith.constant 0 : i32
    %c0_i32_1 = arith.constant 0 : i32
    %c0_i32_2 = arith.constant 0 : i32
    return %c0_i32, %c0_i32_0, %c0_i32_1 : i32, i32, i32
  }
  func.func @transform_4(%arg0: i32) -> (i32, i32) {
    %c0_i32 = arith.constant 0 : i32
    %c0_i32_0 = arith.constant 0 : i32
    %c0_i32_1 = arith.constant 0 : i32
    return %c0_i32, %c0_i32_0 : i32, i32
  }
  func.func @transform_5(%arg0: i32) -> (i32, i32, i32) {
    %c0_i32 = arith.constant 0 : i32
    %c0_i32_0 = arith.constant 0 : i32
    %c0_i32_1 = arith.constant 0 : i32
    %c0_i32_2 = arith.constant 0 : i32
    return %c0_i32, %c0_i32_0, %c0_i32_1 : i32, i32, i32
  }
  func.func @transform_6(%arg0: i32) -> (i32, i32) {
    %c0_i32 = arith.constant 0 : i32
    %c0_i32_0 = arith.constant 0 : i32
    %c0_i32_1 = arith.constant 0 : i32
    return %c0_i32, %c0_i32_0 : i32, i32
  }
  func.func @transform_7(%arg0: i32) -> (i32, i32) {
    %c0_i32 = arith.constant 0 : i32
    %c0_i32_0 = arith.constant 0 : i32
    %c0_i32_1 = arith.constant 0 : i32
    return %c0_i32, %c0_i32_0 : i32, i32
  }
  func.func @transform_8(%arg0: i32) -> (i32, i32, i32) {
    %c0_i32 = arith.constant 0 : i32
    %c0_i32_0 = arith.constant 0 : i32
    %c0_i32_1 = arith.constant 0 : i32
    return %arg0, %c0_i32, %c0_i32_0 : i32, i32, i32
  }
}

</mosaic_0001>

<bundles_post_ra>
// kernel: tpu_custom_call.1
= control target key start
LH: loop header
LB: loop body
LE: loop exit
PB: predicated region body
PF: predicated region fallthrough
CT: control target
= control target key end

     0   :  { %13 = vsyncpa [#allocation3], 0  ;;  %s1738_s0 = inlined_call_operand.vmem [shape: bf16[2,8,256], index: 0, kind: input, shape index: {}]   ;;  %s1739_s1 = inlined_call_operand.hbm [shape: bf16[8,8], index: 1, kind: input, shape index: {}]   ;;  %s1740_s2 = inlined_call_operand.vmem [shape: f32[8,1], index: 2, kind: input, shape index: {}]   ;;  %s1741_s3 = inlined_call_operand.vmem [shape: bf16[3,8,24], index: 3, kind: input, shape index: {}]   ;;  %s1742_s4 = inlined_call_operand.vmem [shape: f32[8,1], index: 4, kind: input, shape index: {}]   ;;  %s1743_s5 = inlined_call_operand.vmem [shape: bf16[3,8,24], index: 5, kind: input, shape index: {}]   ;;  %s1744_s6 = inlined_call_operand.vmem [shape: f32[8,1], index: 6, kind: input, shape index: {}]   ;;  %s1745_s7 = inlined_call_operand.vmem [shape: s32[1,256], index: 7, kind: input, shape index: {}]   ;;  %s1746_s8 = inlined_call_operand.hbm [shape: f32[2,24,256], index: 8, kind: output, shape index: {}]  }
   0x1   :  { %14 = vsyncpa [#allocation4], 0 }
   0x2   :  { %16 = vsyncpa [#allocation4 + $0x1], 0  ;;  %s1315_s27 = smov 0   ;;  %s1317_s28 = smov 0  }
   0x3   :  { %s1319_s29 = smov 0   ;;  %s1321_s30 = smov 0  }
   0x4 LB: > { %s1336_s9 = sadd.s32 4294967295, %s1255_s30   ;;  %s1058_s10 = sadd.s32 4294967294, %s1255_s30   ;;  %s1255_s30 = sphi %s1321_s30, %s1764_s30   ;;  %s1251_s29 = sphi %s1319_s29, %s1763_s29   ;;  %s1247_s28 = sphi %s1317_s28, %s1762_s28   ;;  %s1243_s27 = sphi %s1315_s27, %s1761_s27  }
   0x5   : > { %s1340_s11 = sadd.s32 1, %s1255_s30   ;;  %s202_s12 = sadd.s32 1, %s1251_s29 }
   0x6   : > { %s199_s13 = ssub.s32 %s1255_s30, %s1340_s11  ;;  %p212_p0 = scmp.ne.s32.totalorder %s1251_s29, %s1247_s28 }
   0x7   : > { %p200_p1 = scmp.eq.s32.totalorder %s199_s13, 0  ;;  %p213_p2 = scmp.eq.s32.totalorder %s1336_s9, 1 }
   0x8   : > { %p218_p3 = scmp.ne.s32.totalorder %s1247_s28, %s1243_s27  ;;  %p219_p4 = scmp.eq.s32.totalorder %s1058_s10, 1 }
   0x9   : > { %s1351_s14 = scalar_select %p200_p1, %s1251_s29, %s202_s12  }
   0xa   : > { %p1353_p5 = por %p213_p2, %p212_p0  ;;  %p1357_p6 = por %p219_p4, %p218_p3 }
   0xb   : > { %p1059_p7 = scmp.ge.s32.totalorder %s1255_s30, 1  ;;  %p226_p8 = scmp.lt.s32.totalorder %s1255_s30, 3 }
   0xc   : > { %s1751_s15 = scalar_select %p1353_p5, 1, 0 }
   0xd   : > { %s1752_s16 = scalar_select %p1357_p6, 1, 0 }
   0xe   : > { %p1747_p9 = scmp.eq.s32.totalorder %s1336_s9, 0  ;;  %p1364_p10 = pnand %p1059_p7, %p226_p8 }
   0xf   : > { %s1257_s18 = smov [#allocation2]   ;;  %s1161_s23 = scalar_lea.hbm %s1739_s1, 64 }
  0x10   : > { %s1753_s17 = scalar_select %p1364_p10, 1, 0 }
  0x11   : > { %s239_s19 = sshll.u32 %s1257_s18, 4  ;;  %p1102_p11 = pneg %p1364_p10  ;;  %s240_s19 = int_to_ptr.vmem [resolvable:$true] %s239_s19 }
  0x12   : > { %p1162_p13 = scmp.ne.s32.totalorder %s1739_s1, %s1161_s23  ;;  %p1168_p3 = scmp.lt.u32.totalorder %s1161_s23, %s1739_s1 }
  0x13   : > { %p1372_p12 = pnand %p1747_p9, %p1102_p11 }
  0x15   : > { %p1163_p0 = pneg %p1372_p12 }
  0x17   : > { %p1164_p1 = pnand %p1163_p0, %p1162_p13 }
  0x19   : > { %p1165_p2 = pneg %p1164_p1 }
  0x1b   : > { %p1170_p4 = pnand %p1168_p3, %p1165_p2 }
  0x1d   : > { %1173 = shalt.err (!%p1170_p4)
}
  0x1e   : > { %s1174_s12 = scalar_lea.vmem %s240_s19, 64  ;;  %p1182_p9 = scmp.lt.s32.totalorder %s240_s19, %s240_s19 }
  0x1f   : > { %p1175_p7 = scmp.ne.s32.totalorder %s240_s19, %s1174_s12  ;;  %p1183_p6 = scmp.lt.s32.totalorder %s1174_s12, %s1174_s12 }
  0x21   : > { %p1177_p8 = pnand %p1175_p7, %p1163_p0  ;;  %p1184_p5 = por %p1183_p6, %p1182_p9 }
  0x23   : > { %p1178_p11 = pneg %p1177_p8 }
  0x25   : > { %p1185_p10 = pnand %p1184_p5, %p1178_p11 }
  0x27   : > { %1188 = shalt.err (!%p1185_p10)
}
  0x28   : > { %1105 = dma.hbm_to_vmem [thread:$0]  (!%p1372_p12), %s1739_s1, 64, %s240_s19, [#allocation3]  }
  0x29   : > { %p1755_p13 = scmp.ne.s32.totalorder %s1753_s17, 0 }
  0x2a   : > { %p1756_p1 = scmp.eq.s32.totalorder (!%p1755_p13), %s1336_s9, 0 }
  0x2b   : > { %278 = sbr.rel (%p1755_p13) target bundleno = 1037 (0x40d), region = 52 }
  0x32   : > { %1234 = dma.done.wait (%p1756_p1), [#allocation3], 64   ;;  %p1757_p0 = pmov %p1756_p1 }
  0x33   : > { %p312_p6 = scmp.lt.s32.totalorder %s1336_s9, 1  ;;  %v1258_v0 = vmov 0   ;;  %vm357_vm0 = vcmask 1043456   ;;  %v342_v2 = vld [vmem:[%s1740_s2] sm:$0xff]  ;;  %vm353_vm1 = vcmask 64512   ;;  %s1750_s25 = sand.u32 1, %s1247_s28   ;;  %v318_v17 = vlaneseq }
  0x34   : > { %1236 = vsyncadd (%p1757_p0), [#allocation3], 4294967232  ;;  %396 = vmatprep.mubr.bf16.mxu0 %v1258_v0  ;;  %1157 = vset.pattern.permute.xlu0 %v1258_v0  ;;  %v341_v6 = vld [vmem:[#allocation2] sm:$0xf]  ;;  %s1094_s26 = smul.u32 48, %s1750_s25  ;;  %s1259_s10 = smov 127  }
  0x35   : > { %s313_s20 = scalar_select %p312_p6, %s1336_s9, 1  ;;  %549 = vmatprep.mubr.bf16.mxu1 %v1258_v0  ;;  %1158 = vset.pattern.permute.xlu1 %v1258_v0  ;;  %v713_v16 = vld [vmem:[%s1742_s4] sm:$0xff]  ;;  %v418_v19 = vshrl.u32 %v318_v17, 7  ;;  %v1464_v20 = vand.u32 127, %v318_v17  ;;  %v1267_v22 = vmov 0.0   ;;  %vm507_vm14 = vcmask 195584  }
  0x36   : > { %345 = vperm.xlu0 %1157, %v342_v2   ;;  %s1260_s12 = smov 1   ;;  %s1424_s13 = scalar_lea.vmem [#allocation5], %s1094_s26  ;;  %v321_v18 = vld [vmem:[%s1745_s7] sm:$0x3] }
  0x37   : > { %s1093_s17 = sshll.u32 %s313_s20, 3  ;;  %s1261_s18 = smov 17   ;;  %vm334_vm2 = vcmp.ge.s32.totalorder %v321_v18, 1  ;;  %v1466_v21 = vsub.s32 0, %v418_v19  ;;  %vm322_vm3 = vcmp.ge.s32.totalorder %v1464_v20, 16  ;;  %v423_v26 = vsub.s32 1, %v418_v19 }
  0x38   : > { %s316_s22 = scalar_lea.vmem %s1738_s0, %s1093_s17  ;;  %s1262_s20 = smov 16   ;;  %v1068_v23 = vsel %vm334_vm2, 1.0, %v1267_v22  ;;  %v1472_v28 = vsel %vm322_vm3, 1.0, %v1267_v22  ;;  %vm337_vm4 = vcmp.lt.s32.totalorder %v321_v18, 15  ;;  %vm413_vm5 = vcmp.lt.s32.totalorder %v1464_v20, 17 }
  0x39   : > { %v340_v1 = vld [vmem:[%s316_s22] sm:$0xff]  ;;  %s1263_s17 = smov 113   ;;  %s1264_s19 = smov 112   ;;  %v1470_v27 = vrot.slane %v1068_v23, %v1466_v21  ;;  %v1474_v31 = vrot.slane %v1068_v23, %v423_v26  ;;  %v320_v33 = vadd.s32 128, %v1464_v20  ;;  %v1069_v37 = vsel %vm337_vm4, 1.0, %v1267_v22 }
  0x3a   : > { %v1071_v3 = vcombine.high %v340_v1, %v340_v1  ;;  %v1070_v4 = vcombine.low %v340_v1, %v340_v1  ;;  %s1265_s21 = smov 15   ;;  %s1266_s22 = smov 111   ;;  %vm443_vm6 = vcmp.lt.s32.totalorder %v1464_v20, 16  ;;  %vm496_vm8 = vcmp.lt.s32.totalorder %v1464_v20, 127 }
  0x3b   : > { %v427_v32 = vmul.f32 %v1472_v28, %v1470_v27  ;;  %v1482_v36 = vrot.slane %v1474_v31, %v1466_v21  ;;  %vm329_vm7 = vcmp.lt.s32.totalorder %v320_v33, 240  ;;  %v1494_v41 = vrot.slane %v1069_v37, %v1466_v21  ;;  %s984_s26 = sshll.u32 %s1424_s13, 4  ;;  %s1095_s25 = smul.u32 768, %s1336_s9  ;;  %s1685_s26 = int_to_ptr.vmem [resolvable:$true] %s984_s26 }
  0x3c   : > { %1072 = vmatprep.subr.msk.bf16.mxu0 %vm357_vm0, %v1071_v3  ;;  %v359_v5 = vsel %vm357_vm0, %v1070_v4, 0  ;;  %v1496_v42 = vrot.slane %v1069_v37, %v423_v26  ;;  %vm487_vm9 = vcmp.lt.s32.totalorder %v1464_v20, 1  ;;  %v1504_v48 = vsel %vm329_vm7, 1.0, %v1267_v22  ;;  %s1189_s9 = scalar_lea.vmem %s1685_s26, 768  ;;  %p1759_p9 = scmp.ne.s32.totalorder %s1751_s15, 0 }
  0x3d   : > { %365 = vmatpush1.bf16.msra.mxu0 %v359_v5  ;;  %v1487_v39 = vrot.slane %v427_v32, %v1466_v21  ;;  %vm612_vm10 = vcmp.lt.s32.totalorder %v1464_v20, 113  ;;  %v616_v57 = vmul.f32 %v1504_v48, %v1474_v31  ;;  %vm631_vm11 = vcmp.lt.s32.totalorder %v1464_v20, 112  ;;  %p1190_p5 = scmp.ne.s32.totalorder %s1685_s26, %s1189_s9 }
  0x3e   : > { %v466_v1 = vmul.f32 %v1472_v28, %v1494_v41  ;;  %vm452_vm12 = vcmp.lt.s32.totalorder %v1464_v20, 15  ;;  %vm640_vm13 = vcmp.lt.s32.totalorder %v1464_v20, 111  ;;  %v1557_v22 = vrot.slane %v1494_v41, %v1466_v21 }
  0x3f   : > { %v1527_v2 = vrot.slane %v616_v57, %v1466_v21  ;;  %p1191_p10 = pnand %p1190_p5, %p1759_p9 }
  0x40   : > { %1073 = vmatmul.mubr.msk.bf16.vlgmr.msra.gmra.mrb[0].mxu0 %vm353_vm1, %v341_v6 }
  0x41   : > { %599 = vmatprep.mubr.bf16.mxu0 %v1258_v0  ;;  %p1192_p12 = pneg %p1191_p10 }
  0xb5   : > { %v346_v7 = vpop.permute.xlu0 %345 }
 0x113   : > { %v398_v8 = vpop.f32.mrb[0].mxu0 }
 0x114   : > { %v399_v9 = vadd.f32 %v398_v8, %v346_v7  ;;  %v400_v10 = vpop.f32.mrb[1].mxu0 }
 0x115   : > { %v401_v11 = vadd.f32 %v400_v10, %v346_v7  ;;  %v402_v12 = vpop.f32.mrb[2].mxu0  ;;  %v644_v10 = vmul.f32 %v1504_v48, %v1496_v42 }
 0x116   : > { %v1416_v13 = vmax.f32 %v399_v9, 0.0  ;;  %v403_v14 = vpop.f32.mrb[3].mxu0 }
 0x117   : > { %v1418_v15 = vmax.f32 %v401_v11, 0.0  ;;  %v1540_v14 = vrot.slane %v466_v1, %v1466_v21  ;;  %v1565_v26 = vrot.slane %v644_v10, %v1466_v21 }
 0x118   : > { %492 = vrot.lane.b32.xlu1 %v1416_v13, %s1259_s10  ;;  %483 = vrot.lane.b32.xlu0 %v1416_v13, %s1260_s12  ;;  %407 = vst [vmem:[%s1424_s13] sm:$0xff] %v1416_v13 }
 0x119   : > { %408 = vst [vmem:[%s1424_s13 + $0x8] sm:$0xff] %v1418_v15 }
 0x11c   : > { %409 = vrot.lane.b32.xlu1 %v1416_v13, %s1261_s18  ;;  %494 = vrot.lane.b32.xlu0 %v1418_v15, %s1259_s10 }
 0x120   : > { %439 = vrot.lane.b32.xlu1 %v1416_v13, %s1262_s20  ;;  %411 = vrot.lane.b32.xlu0 %v1418_v15, %s1261_s18 }
 0x124   : > { %608 = vrot.lane.b32.xlu1 %v1416_v13, %s1263_s17  ;;  %441 = vrot.lane.b32.xlu0 %v1418_v15, %s1262_s20 }
 0x128   : > { %485 = vrot.lane.b32.xlu1 %v1418_v15, %s1260_s12  ;;  %610 = vrot.lane.b32.xlu0 %v1418_v15, %s1263_s17 }
 0x12c   : > { %627 = vrot.lane.b32.xlu1 %v1416_v13, %s1264_s19  ;;  %629 = vrot.lane.b32.xlu0 %v1418_v15, %s1264_s19 }
 0x130   : > { %448 = vrot.lane.b32.xlu1 %v1416_v13, %s1265_s21  ;;  %450 = vrot.lane.b32.xlu0 %v1418_v15, %s1265_s21 }
 0x134   : > { %636 = vrot.lane.b32.xlu1 %v1416_v13, %s1266_s22  ;;  %638 = vrot.lane.b32.xlu0 %v1418_v15, %s1266_s22 }
 0x138   : > { %716 = vperm.xlu1 %1158, %v713_v16  }
 0x18a   : > { %v493_v24 = vpop.permute.xlu1 %492  ;;  %v484_v25 = vpop.permute.xlu0 %483 }
 0x18e   : > { %v410_v29 = vpop.permute.xlu1 %409  ;;  %v495_v30 = vpop.permute.xlu0 %494 }
 0x18f   : > { %v497_v49 = vsel %vm496_vm8, %v493_v24, %v495_v30  ;;  %v498_v53 = vsel %vm496_vm8, %v495_v30, %v493_v24 }
 0x190   : > { %v499_v58 = vmul.f32 %v497_v49, %v1494_v41  ;;  %v500_v61 = vmul.f32 %v498_v53, %v1496_v42 }
 0x192   : > { %v440_v34 = vpop.permute.xlu1 %439  ;;  %v412_v35 = vpop.permute.xlu0 %411  ;;  %v505_v7 = vpack.c.bf16 %v499_v58, %v499_v58  ;;  %v506_v11 = vpack.c.bf16 %v500_v61, %v500_v61 }
 0x193   : > { %v414_v38 = vsel %vm413_vm5, %v410_v29, %v412_v35  ;;  %v415_v40 = vsel %vm413_vm5, %v412_v35, %v410_v29  ;;  %v1074_v35 = vld [vmem:[%s1741_s3 + $0x4] sm:$0xf] }
 0x194   : > { %v438_v43 = vmul.f32 %v1482_v36, %v414_v38  ;;  %v437_v50 = vmul.f32 %v1487_v39, %v415_v40 }
 0x196   : > { %v609_v44 = vpop.permute.xlu1 %608  ;;  %v442_v45 = vpop.permute.xlu0 %441 }
 0x197   : > { %v444_v46 = vsel %vm443_vm6, %v440_v34, %v442_v45  ;;  %v445_v47 = vsel %vm443_vm6, %v442_v45, %v440_v34 }
 0x198   : > { %v446_v51 = vmul.f32 %v1472_v28, %v445_v47  ;;  %v480_v52 = vpack.c.bf16 %v444_v46, %v438_v43 }
 0x19a   : > { %v479_v54 = vpack.c.bf16 %v446_v51, %v437_v50  ;;  %v486_v55 = vpop.permute.xlu1 %485  ;;  %v611_v56 = vpop.permute.xlu0 %610  ;;  %567 = vmatprep.subr.bf16.mxu0 %v480_v52  ;;  %v478_v50 = vld [vmem:[%s1741_s3] sm:$0xf] }
 0x19b   : > { %v488_v59 = vsel %vm487_vm9, %v484_v25, %v486_v55  ;;  %v489_v60 = vsel %vm487_vm9, %v486_v55, %v484_v25  ;;  %v614_v8 = vsel %vm612_vm10, %v611_v56, %v609_v44  ;;  %v613_v16 = vsel %vm612_vm10, %v609_v44, %v611_v56 }
 0x19c   : > { %v490_v62 = vmul.f32 %v489_v60, %v1470_v27  ;;  %568 = vmatpush1.bf16.msra.mxu0 %v479_v54  ;;  %v491_v63 = vmul.f32 %v488_v59, %v1474_v31  ;;  %v626_v17 = vmul.f32 %v1527_v2, %v614_v8  ;;  %v512_v25 = vsel %vm357_vm0, %v505_v7, 0  ;;  %v1079_v54 = vld [vmem:[%s1741_s3 + $0x8] sm:$0xf] }
 0x19e   : > { %v628_v3 = vpop.permute.xlu1 %627  ;;  %v630_v4 = vpop.permute.xlu0 %629  ;;  %v504_v5 = vpack.c.bf16 %v1418_v15, %v491_v63  ;;  %v503_v6 = vpack.c.bf16 %v1416_v13, %v490_v62  ;;  %v1544_v13 = vrot.slane %v1496_v42, %v1466_v21  ;;  %v1548_v15 = vrot.slane %v1470_v27, %v1466_v21 }
 0x19f   : > { %v633_v9 = vsel %vm631_vm11, %v630_v4, %v628_v3  ;;  %v632_v29 = vsel %vm631_vm11, %v628_v3, %v630_v4 }
 0x1a0   : > { %v635_v12 = vmul.f32 %v1504_v48, %v633_v9  ;;  %517 = vmatprep.subr.bf16.mxu1 %v504_v5  ;;  %v625_v34 = vmul.f32 %v1548_v15, %v613_v16 }
 0x1a1   : > { %518 = vmatpush1.bf16.msra.mxu1 %v503_v6 }
 0x1a2   : > { %v449_v18 = vpop.permute.xlu1 %448  ;;  %v451_v19 = vpop.permute.xlu0 %450  ;;  %1075 = vmatprep.subr.msk.bf16.mxu1 %vm357_vm0, %v506_v11  ;;  %v658_v33 = vpack.c.bf16 %v635_v12, %v626_v17  ;;  %v657_v43 = vpack.c.bf16 %v632_v29, %v625_v34  ;;  %v958_v17 = vld [vmem:[%s1744_s6] sm:$0xff] }
 0x1a3   : > { %v453_v23 = vsel %vm452_vm12, %v449_v18, %v451_v19  ;;  %v454_v24 = vsel %vm452_vm12, %v451_v19, %v449_v18 }
 0x1a4   : > { %v476_v30 = vmul.f32 %v1540_v14, %v454_v24  ;;  %v477_v32 = vmul.f32 %v1544_v13, %v453_v23 }
 0x1a5   : > { %520 = vmatpush1.bf16.msra.mxu1 %v512_v25 }
 0x1a6   : > { %v481_v37 = vpack.c.bf16 %v476_v30, %v476_v30  ;;  %v482_v38 = vpack.c.bf16 %v477_v32, %v477_v32  ;;  %v637_v21 = vpop.permute.xlu1 %636  ;;  %v639_v40 = vpop.permute.xlu0 %638  ;;  %670 = vmatprep.subr.bf16.mxu1 %v658_v33 }
 0x1a7   : > { %v641_v44 = vsel %vm640_vm13, %v637_v21, %v639_v40  ;;  %v642_v45 = vsel %vm640_vm13, %v639_v40, %v637_v21 }
 0x1a8   : > { %v653_v46 = vmul.f32 %v1557_v22, %v641_v44  ;;  %v654_v47 = vmul.f32 %v1565_v26, %v642_v45  ;;  %1076 = vmatmul.mubr.msk.bf16.vlgmr.msra.gmra.mrb[0].mxu1 %vm507_vm14, %v1074_v35  ;;  %1077 = vmatprep.subr.msk.bf16.mxu0 %vm357_vm0, %v482_v38  ;;  %v562_v49 = vsel %vm357_vm0, %v481_v37, 0 }
 0x1a9   : > { %570 = vmatpush1.bf16.msra.mxu0 %v562_v49  ;;  %671 = vmatpush1.bf16.msra.mxu1 %v657_v43 }
 0x1aa   : > { %v659_v51 = vpack.c.bf16 %v653_v46, %v653_v46  ;;  %v660_v52 = vpack.c.bf16 %v654_v47, %v654_v47  ;;  %702 = vmatprep.mubr.bf16.mxu1 %v1258_v0 }
 0x1ac   : > { %1078 = vmatmul.mubr.msk.bf16.vlgmr.msra.gmra.mrb[4].mxu0 %vm507_vm14, %v478_v50  ;;  %1080 = vmatprep.subr.msk.bf16.mxu1 %vm357_vm0, %v660_v52  ;;  %v665_v53 = vsel %vm357_vm0, %v659_v51, 0 }
 0x1ad   : > { %673 = vmatpush1.bf16.msra.mxu1 %v665_v53  ;;  %817 = vmatprep.mubr.bf16.mxu0 %v1258_v0 }
 0x1b0   : > { %1081 = vmatmul.mubr.msk.bf16.vlgmr.msra.gmra.mrb[4].mxu1 %vm507_vm14, %v1079_v54 }
 0x1b1   : > { %867 = vmatprep.mubr.bf16.mxu1 %v1258_v0 }
 0x1b7   : > { %v717_v4 = vpop.permute.xlu1 %716 }
 0x27b   : > { %v551_v55 = vpop.f32.mrb[0].mxu1 }
 0x27c   : > { %v553_v56 = vpop.f32.mrb[1].mxu1 }
 0x27d   : > { %v555_v57 = vpop.f32.mrb[2].mxu1 }
 0x27e   : > { %v556_v58 = vpop.f32.mrb[3].mxu1 }
 0x27f   : > { %v601_v59 = vpop.f32.mrb[4].mxu0 }
 0x280   : > { %v602_v60 = vadd.f32 %v601_v59, %v551_v55  ;;  %v603_v61 = vpop.f32.mrb[5].mxu0 }
 0x281   : > { %v604_v62 = vadd.f32 %v603_v61, %v553_v56  ;;  %v605_v63 = vpop.f32.mrb[6].mxu0 }
 0x282   : > { %v606_v1 = vpop.f32.mrb[7].mxu0 }
 0x283   : > { %v704_v3 = vpop.f32.mrb[4].mxu1 }
 0x284   : > { %v711_v5 = vadd.f32 %v704_v3, %v602_v60  ;;  %v706_v6 = vpop.f32.mrb[5].mxu1 }
 0x285   : > { %v712_v7 = vadd.f32 %v706_v6, %v604_v62  ;;  %v708_v8 = vpop.f32.mrb[6].mxu1 }
 0x286   : > { %v719_v9 = vadd.f32 %v717_v4, %v711_v5  ;;  %v709_v10 = vpop.f32.mrb[7].mxu1 }
 0x287   : > { %v720_v11 = vadd.f32 %v717_v4, %v712_v7 }
 0x288   : > { %v721_v12 = vmax.f32 %v719_v9, 0.0 }
 0x289   : > { %v722_v16 = vmax.f32 %v720_v11, 0.0 }
 0x28a   : > { %754 = vrot.lane.b32.xlu0 %v721_v12, %s1260_s12  ;;  %723 = vst [vmem:[%s1424_s13 + $0x10] sm:$0xff] %v721_v12 }
 0x28b   : > { %756 = vrot.lane.b32.xlu1 %v722_v16, %s1260_s12  ;;  %724 = vst [vmem:[%s1424_s13 + $0x18] sm:$0xff] %v722_v16  ;;  %s1690_s12 = scalar_lea.hbm %s1746_s8, %s1095_s25 }
 0x28e   : > { %762 = vrot.lane.b32.xlu0 %v721_v12, %s1259_s10 }
 0x28f   : > { %764 = vrot.lane.b32.xlu1 %v722_v16, %s1259_s10 }
 0x292   : > { %725 = vrot.lane.b32.xlu0 %v721_v12, %s1261_s18 }
 0x293   : > { %727 = vrot.lane.b32.xlu1 %v722_v16, %s1261_s18  ;;  %s1758_s18 = sand.u32 1, %s1247_s28  }
 0x296   : > { %733 = vrot.lane.b32.xlu0 %v721_v12, %s1262_s20 }
 0x297   : > { %735 = vrot.lane.b32.xlu1 %v722_v16, %s1262_s20 }
 0x29a   : > { %876 = vrot.lane.b32.xlu0 %v721_v12, %s1263_s17 }
 0x29b   : > { %878 = vrot.lane.b32.xlu1 %v722_v16, %s1263_s17  ;;  %s1696_s17 = scalar_lea.sflag [#allocation4], %s1758_s18 }
 0x29e   : > { %884 = vrot.lane.b32.xlu0 %v721_v12, %s1264_s19 }
 0x29f   : > { %886 = vrot.lane.b32.xlu1 %v722_v16, %s1264_s19  ;;  %s1268_s19 = smov [#allocation5]  }
 0x2a2   : > { %741 = vrot.lane.b32.xlu0 %v721_v12, %s1265_s21 }
 0x2a3   : > { %743 = vrot.lane.b32.xlu1 %v722_v16, %s1265_s21  ;;  %s1193_s21 = sshll.u32 %s1268_s19, 4  ;;  %s1194_s21 = int_to_ptr.vmem [resolvable:$false] %s1193_s21 }
 0x2a4   : > { %p1196_p2 = scmp.lt.s32.totalorder %s1685_s26, %s1194_s21 }
 0x2a6   : > { %892 = vrot.lane.b32.xlu0 %v721_v12, %s1266_s22 }
 0x2a7   : > { %894 = vrot.lane.b32.xlu1 %v722_v16, %s1266_s22  ;;  %s1195_s22 = scalar_lea.vmem %s1194_s21, 1536 }
 0x2a8   : > { %p1197_p3 = scmp.lt.s32.totalorder %s1195_s22, %s1189_s9 }
 0x2aa   : > { %961 = vperm.xlu0 %1157, %v958_v17   ;;  %p1198_p4 = por %p1197_p3, %p1196_p2 }
 0x2ac   : > { %p1199_p7 = pnand %p1198_p4, %p1192_p12 }
 0x2fc   : > { %v755_v18 = vpop.permute.xlu0 %754 }
 0x2fd   : > { %v757_v19 = vpop.permute.xlu1 %756 }
 0x2fe   : > { %v758_v23 = vsel %vm487_vm9, %v755_v18, %v757_v19  ;;  %v759_v24 = vsel %vm487_vm9, %v757_v19, %v755_v18 }
 0x2ff   : > { %v760_v25 = vmul.f32 %v759_v24, %v1470_v27  ;;  %v761_v29 = vmul.f32 %v758_v23, %v1474_v31 }
 0x300   : > { %v763_v30 = vpop.permute.xlu0 %762 }
 0x301   : > { %v772_v32 = vpack.c.bf16 %v721_v12, %v760_v25  ;;  %v765_v33 = vpop.permute.xlu1 %764  ;;  %v773_v34 = vpack.c.bf16 %v722_v16, %v761_v29 }
 0x302   : > { %v766_v35 = vsel %vm496_vm8, %v763_v30, %v765_v33  ;;  %v767_v37 = vsel %vm496_vm8, %v765_v33, %v763_v30 }
 0x303   : > { %v768_v38 = vmul.f32 %v766_v35, %v1494_v41  ;;  %v769_v21 = vmul.f32 %v767_v37, %v1496_v42  ;;  %785 = vmatprep.subr.bf16.mxu0 %v773_v34  ;;  %v1082_v42 = vld [vmem:[%s1743_s5 + $0x4] sm:$0xf] }
 0x304   : > { %786 = vmatpush1.bf16.msra.mxu0 %v772_v32  ;;  %v726_v40 = vpop.permute.xlu0 %725 }
 0x305   : > { %v774_v27 = vpack.c.bf16 %v768_v38, %v768_v38  ;;  %v775_v43 = vpack.c.bf16 %v769_v21, %v769_v21  ;;  %v728_v31 = vpop.permute.xlu1 %727 }
 0x306   : > { %v729_v44 = vsel %vm413_vm5, %v726_v40, %v728_v31  ;;  %v730_v46 = vsel %vm413_vm5, %v728_v31, %v726_v40 }
 0x307   : > { %1083 = vmatprep.subr.msk.bf16.mxu0 %vm357_vm0, %v775_v43  ;;  %v780_v45 = vsel %vm357_vm0, %v774_v27, 0  ;;  %v732_v47 = vmul.f32 %v729_v44, %v1482_v36  ;;  %v731_v52 = vmul.f32 %v730_v46, %v1487_v39 }
 0x308   : > { %788 = vmatpush1.bf16.msra.mxu0 %v780_v45  ;;  %v734_v41 = vpop.permute.xlu0 %733 }
 0x309   : > { %v736_v49 = vpop.permute.xlu1 %735 }
 0x30a   : > { %v737_v50 = vsel %vm443_vm6, %v734_v41, %v736_v49  ;;  %v738_v51 = vsel %vm443_vm6, %v736_v49, %v734_v41 }
 0x30b   : > { %v739_v53 = vmul.f32 %v1472_v28, %v738_v51  ;;  %v751_v54 = vpack.c.bf16 %v737_v50, %v732_v47  ;;  %1084 = vmatmul.mubr.msk.bf16.vlgmr.msra.gmra.mrb[8].mxu0 %vm507_vm14, %v1082_v42 }
 0x30c   : > { %v877_v55 = vpop.permute.xlu0 %876  ;;  %947 = vmatprep.mubr.bf16.mxu0 %v1258_v0 }
 0x30d   : > { %v750_v56 = vpack.c.bf16 %v739_v53, %v731_v52  ;;  %v879_v57 = vpop.permute.xlu1 %878  ;;  %835 = vmatprep.subr.bf16.mxu1 %v751_v54 }
 0x30e   : > { %v881_v36 = vsel %vm612_vm10, %v879_v57, %v877_v55  ;;  %v880_v59 = vsel %vm612_vm10, %v877_v55, %v879_v57 }
 0x30f   : > { %836 = vmatpush1.bf16.msra.mxu1 %v750_v56  ;;  %v883_v60 = vmul.f32 %v881_v36, %v1527_v2  ;;  %v882_v62 = vmul.f32 %v880_v59, %v1548_v15 }
 0x310   : > { %v885_v58 = vpop.permute.xlu0 %884 }
 0x311   : > { %v887_v39 = vpop.permute.xlu1 %886 }
 0x312   : > { %v889_v28 = vsel %vm631_vm11, %v887_v39, %v885_v58  ;;  %v888_v0 = vsel %vm631_vm11, %v885_v58, %v887_v39 }
 0x313   : > { %v891_v61 = vmul.f32 %v1504_v48, %v889_v28  ;;  %v902_v4 = vpack.c.bf16 %v888_v0, %v882_v62 }
 0x314   : > { %v742_v63 = vpop.permute.xlu0 %741 }
 0x315   : > { %v744_v1 = vpop.permute.xlu1 %743  ;;  %v903_v3 = vpack.c.bf16 %v891_v61, %v883_v60 }
 0x316   : > { %v745_v5 = vsel %vm452_vm12, %v742_v63, %v744_v1  ;;  %v746_v6 = vsel %vm452_vm12, %v744_v1, %v742_v63 }
 0x317   : > { %v747_v7 = vmul.f32 %v746_v6, %v1540_v14  ;;  %v748_v2 = vmul.f32 %v745_v5, %v1544_v13  ;;  %915 = vmatprep.subr.bf16.mxu0 %v903_v3  ;;  %v749_v13 = vld [vmem:[%s1743_s5] sm:$0xf] }
 0x318   : > { %916 = vmatpush1.bf16.msra.mxu0 %v902_v4  ;;  %v893_v8 = vpop.permute.xlu0 %892 }
 0x319   : > { %v752_v48 = vpack.c.bf16 %v747_v7, %v747_v7  ;;  %v753_v9 = vpack.c.bf16 %v748_v2, %v748_v2  ;;  %v895_v15 = vpop.permute.xlu1 %894 }
 0x31a   : > { %v896_v10 = vsel %vm640_vm13, %v893_v8, %v895_v15  ;;  %v897_v11 = vsel %vm640_vm13, %v895_v15, %v893_v8 }
 0x31b   : > { %v898_v12 = vmul.f32 %v896_v10, %v1557_v22  ;;  %v899_v16 = vmul.f32 %v897_v11, %v1565_v26  ;;  %1085 = vmatprep.subr.msk.bf16.mxu1 %vm357_vm0, %v753_v9  ;;  %v830_v14 = vsel %vm357_vm0, %v752_v48, 0  ;;  %v1087_v22 = vld [vmem:[%s1743_s5 + $0x8] sm:$0xf] }
 0x31c   : > { %838 = vmatpush1.bf16.msra.mxu1 %v830_v14 }
 0x31d   : > { %v904_v17 = vpack.c.bf16 %v898_v12, %v898_v12  ;;  %v905_v18 = vpack.c.bf16 %v899_v16, %v899_v16 }
 0x31f   : > { %1086 = vmatmul.mubr.msk.bf16.vlgmr.msra.gmra.mrb[8].mxu1 %vm507_vm14, %v749_v13  ;;  %1088 = vmatprep.subr.msk.bf16.mxu0 %vm357_vm0, %v905_v18  ;;  %v910_v20 = vsel %vm357_vm0, %v904_v17, 0 }
 0x320   : > { %918 = vmatpush1.bf16.msra.mxu0 %v910_v20 }
 0x323   : > { %1089 = vmatmul.mubr.msk.bf16.vlgmr.msra.gmra.mrb[12].mxu0 %vm507_vm14, %v1087_v22 }
 0x329   : > { %v962_v21 = vpop.permute.xlu0 %961 }
 0x3de   : > { %v819_v26 = vpop.f32.mrb[8].mxu0 }
 0x3df   : > { %v821_v19 = vpop.f32.mrb[9].mxu0 }
 0x3e0   : > { %v823_v23 = vpop.f32.mrb[10].mxu0 }
 0x3e1   : > { %v824_v24 = vpop.f32.mrb[11].mxu0 }
 0x3f2   : > { %v869_v25 = vpop.f32.mrb[8].mxu1 }
 0x3f3   : > { %v870_v29 = vadd.f32 %v869_v25, %v819_v26  ;;  %v871_v30 = vpop.f32.mrb[9].mxu1 }
 0x3f4   : > { %v872_v32 = vadd.f32 %v871_v30, %v821_v19  ;;  %v873_v33 = vpop.f32.mrb[10].mxu1 }
 0x3f5   : > { %v874_v34 = vpop.f32.mrb[11].mxu1 }
 0x3f6   : > { %v949_v35 = vpop.f32.mrb[12].mxu0 }
 0x3f7   : > { %v956_v37 = vadd.f32 %v949_v35, %v870_v29  ;;  %v951_v38 = vpop.f32.mrb[13].mxu0 }
 0x3f8   : > { %v957_v40 = vadd.f32 %v951_v38, %v872_v32  ;;  %v953_v27 = vpop.f32.mrb[14].mxu0 }
 0x3f9   : > { %v964_v43 = vadd.f32 %v962_v21, %v956_v37  ;;  %v954_v31 = vpop.f32.mrb[15].mxu0 }
 0x3fa   : > { %v965_v44 = vadd.f32 %v962_v21, %v957_v40 }
 0x3fb   : > { %v966_v45 = vmax.f32 %v964_v43, 0.0 }
 0x3fc   : > { %v967_v46 = vmax.f32 %v965_v44, 0.0 }
 0x3fd   : > { %968 = vst [vmem:[%s1424_s13 + $0x20] sm:$0xff] %v966_v45 }
 0x3fe   : > { %969 = vst [vmem:[%s1424_s13 + $0x28] sm:$0xff] %v967_v46 }
 0x3ff   : > { %1202 = shalt.err (!%p1199_p7)
}
 0x400   : > { %s1203_s13 = scalar_lea.hbm %s1690_s12, 768  ;;  %s1207_s23 = scalar_lea.hbm %s1746_s8, 1536 }
 0x401   : > { %p1204_p8 = scmp.ne.s32.totalorder %s1690_s12, %s1203_s13  ;;  %p1208_p1 = scmp.lt.u32.totalorder %s1690_s12, %s1746_s8 }
 0x402   : > { %p1209_p0 = scmp.lt.u32.totalorder %s1207_s23, %s1203_s13  ;;  %p1211_p5 = scmp.lt.u32.totalorder %s1203_s13, %s1690_s12 }
 0x403   : > { %p1205_p11 = pnand %p1204_p8, %p1759_p9 }
 0x404   : > { %p1210_p6 = por %p1209_p0, %p1208_p1 }
 0x405   : > { %p1206_p13 = pneg %p1205_p11 }
 0x406   : > { %p1212_p10 = por %p1211_p5, %p1210_p6 }
 0x408   : > { %p1213_p12 = pnand %p1212_p10, %p1206_p13 }
 0x40a   : > { %1216 = shalt.err (!%p1213_p12)
}
 0x40b   : > { %s1269_s9 = smov 256  }
 0x40c   : > { %1100 = dma.vmem_to_hbm [thread:$0]  (%p1759_p9), %s1685_s26, 768, %s1690_s12, %s1696_s17, %s1269_s9, %s1269_s9, %s1262_s20  }
 0x40d PF: > { %p1112_p2 = scmp.ge.s32.totalorder %s1255_s30, 2  ;;  %s999_s19 = sand.u32 1, %s1243_s27  }
 0x40e   : > { %p1760_p3 = scmp.ne.s32.totalorder %s1752_s16, 0  ;;  %s1000_s21 = scalar_lea.sflag [#allocation4], %s999_s19 }
 0x410   : > { %p1107_p4 = pnand %p1112_p2, %p1760_p3 }
 0x412   : > { %1238 = dma.done.wait (!%p1107_p4), %s1000_s21, 768  }
 0x413   : > { %1240 = vsyncadd (!%p1107_p4), %s1000_s21, 4294966528  ;;  %p19_p7 = scmp.ge.s32.totalorder %s1340_s11, 4   ;;  %s1761_s27 = smov %s1247_s28 }
 0x414   : > { %s1762_s28 = smov %s1251_s29  ;;  %s1763_s29 = smov %s1351_s14 }
 0x415   : > { %s1764_s30 = smov %s1340_s11  ;;  %21 = sbr.rel (!%p19_p7) target bundleno = 4 (0x4), region = 96 }
 0x41c   :  { %1005 = vsyncpa [#allocation3], 1 }
 0x41d   :  { %1007 = vsyncpa [#allocation3 + $0x1], 1 }
 0x41e   :  { %1008 = vsyncpa [#allocation4], 1 }
 0x41f   :  { %1010 = vsyncpa [#allocation4 + $0x1], 1 }

</bundles_post_ra>
